<compile_context>
chip_gen: v7x
topology: tpu7x:2x2x1
jax: 0.10.0
libtpu: 0.0.40
codegen_flags: <defaults>
</compile_context>

<pallas_src>
import functools

import jax
import jax.numpy as jnp
from jax.experimental import pallas as pl
from jax.experimental.pallas import tpu as pltpu

LANE = 128
MAX_TILE_ROWS = 2048   # (2048,128) f32 block = 1 MiB; 2 inputs x 2 bufs = 4 MiB


def _round_up(x, m):
    return ((x + m - 1) // m) * m


def _num_tensorcores():
    """Best-effort TensorCores per device: 2 on megacore chips (v4/v5p/v7x)."""
    try:
        kind = jax.devices()[0].device_kind.lower()
    except Exception:
        return 1
    if any(t in kind for t in ("lite", "v5e", "v6e", "v2", "v3")):
        return 1
    if any(t in kind for t in ("v4", "v5p", "v5", "v7")):
        return 2
    return 1


def _rmsle_kernel(pred_ref, actual_ref, out_ref, acc_ref, *,
                  rows, tile_rows, num_blocks, blocks_per_split, may_have_dup):
    c = pl.program_id(0)          # split index ("parallel", one per TensorCore)
    i = pl.program_id(1)          # block index within split ("arbitrary")
    blk = c * blocks_per_split + i

    @pl.when(i == 0)
    def _init():
        acc_ref[...] = jnp.zeros_like(acc_ref)

    def _d_sq():
        p = pred_ref[...].astype(jnp.float32)
        a = actual_ref[...].astype(jnp.float32)
        p_log = jnp.log(p + 1.0)
        a_log = jnp.log(a + 1.0)
        eps = jnp.float32(1.0)
        # pred_log[pred_log != pred_log] = eps  (NaN -> 1), same for actual.
        p_log = jnp.where(jnp.isnan(p_log), eps, p_log)
        a_log = jnp.where(jnp.isnan(a_log), eps, a_log)
        d = p_log - a_log
        return d * d

    def _fold(d_sq):
        # (tile_rows,128) -> (8,128) with pure VPU adds; the single XLU
        # cross-lane reduce happens only once, in the finalize step below.
        acc_ref[...] += jnp.sum(d_sq.reshape(tile_rows // 8, 8, LANE), axis=0)

    def _acc_full():
        _fold(_d_sq())

    def _acc_masked():
        # The last block may read past the logical end of the (rows,128) view;
        # garbage rows are zeroed with a true select (NaN/Inf-safe).
        d_sq = _d_sq()
        start_row = blk * tile_rows
        row_ids = jax.lax.broadcasted_iota(jnp.int32, (tile_rows, LANE), 0)
        _fold(jnp.where((row_ids + start_row) < rows, d_sq, 0.0))

    partial_last = (rows % tile_rows) != 0     # static (Python-level)
    if partial_last:
        # Interior blocks: no mask work at all. Last real block: masked.
        # Duplicated clamped blocks (blk >= num_blocks): skip all compute.
        if num_blocks > 1:
            pl.when(blk < num_blocks - 1)(_acc_full)
        pl.when(blk == num_blocks - 1)(_acc_masked)
    elif may_have_dup:
        pl.when(blk < num_blocks)(_acc_full)
    else:
        _acc_full()

    @pl.when(i == pl.num_programs(1) - 1)
    def _finalize():
        out_ref[0, 0] = jnp.sum(acc_ref[...])


def rmsle_loss(pred, actual):
    assert pred.shape == actual.shape
    flat_p = pred.reshape(-1)     # contiguous flatten: no HBM copy
    flat_a = actual.reshape(-1)
    n = flat_p.shape[0]

    rows = n // LANE
    m = rows * LANE
    total = jnp.float32(0.0)

    if rows > 0:
        # Row alignment of the block's second-to-last dim depends on dtype
        # packing (8 for 4-byte, 16 for 2-byte, 32 for 1-byte).
        row_align = 8
        for dt in (flat_p.dtype, flat_a.dtype):
            row_align = max(row_align, 32 // max(1, jnp.dtype(dt).itemsize))
        tile_rows = min(MAX_TILE_ROWS, _round_up(rows, row_align))
        num_blocks = pl.cdiv(rows, tile_rows)
        num_splits = max(1, min(_num_tensorcores(), num_blocks))
        bpc = pl.cdiv(num_blocks, num_splits)

        if m == n:
            # No-op bitcast when n is a multiple of 128.
            p2 = flat_p.reshape(rows, LANE)
            a2 = flat_a.reshape(rows, LANE)
        else:
            # TODO(synk): this prefix slice still materializes an HBM copy for
            # non-multiple-of-128 inputs; a 1-D-block in-kernel tail mask would
            # remove it but needs reshape/iota support not relied on here.
            p2 = flat_p[:m].reshape(rows, LANE)
            a2 = flat_a[:m].reshape(rows, LANE)

        def in_map(c, i):
            # Clamp so we never index a block fully outside the array; the
            # in-kernel gate (on the unclamped index) skips its compute.
            return (jnp.minimum(c * bpc + i, num_blocks - 1), 0)

        kern = functools.partial(
            _rmsle_kernel, rows=rows, tile_rows=tile_rows,
            num_blocks=num_blocks, blocks_per_split=bpc,
            may_have_dup=(num_splits * bpc != num_blocks))

        in_bytes = m * (jnp.dtype(flat_p.dtype).itemsize +
                        jnp.dtype(flat_a.dtype).itemsize)
        cost = pl.CostEstimate(flops=10 * m, transcendentals=2 * m,
                               bytes_accessed=in_bytes + num_splits * 4)

        partials = pl.pallas_call(
            kern,
            out_shape=jax.ShapeDtypeStruct((num_splits, 1), jnp.float32),
            grid_spec=pltpu.PrefetchScalarGridSpec(
                num_scalar_prefetch=0,
                grid=(num_splits, bpc),
                in_specs=[
                    pl.BlockSpec((tile_rows, LANE), in_map),
                    pl.BlockSpec((tile_rows, LANE), in_map),
                ],
                out_specs=pl.BlockSpec((1, 1), lambda c, i: (c, 0),
                                       memory_space=pltpu.SMEM),
                scratch_shapes=[pltpu.VMEM((8, LANE), jnp.float32)],
            ),
            compiler_params=pltpu.CompilerParams(
                dimension_semantics=("parallel", "arbitrary"),
                vmem_limit_bytes=32 * 1024 * 1024),
            cost_estimate=cost,
        )(p2, a2)
        total = total + jnp.sum(partials)

    rem = n - m
    if rem > 0:
        # <128-element tail: plain jnp (tiny), same semantics as the kernel.
        tp = flat_p[m:].astype(jnp.float32)
        ta = flat_a[m:].astype(jnp.float32)
        tpl = jnp.log(tp + 1.0)
        tal = jnp.log(ta + 1.0)
        tpl = jnp.where(jnp.isnan(tpl), 1.0, tpl)
        tal = jnp.where(jnp.isnan(tal), 1.0, tal)
        total = total + jnp.sum((tpl - tal) ** 2)

    return total


def _ref_loss(p, a):
    p_log = jnp.log(p.astype(jnp.float32) + 1.0)
    a_log = jnp.log(a.astype(jnp.float32) + 1.0)
    p_log = jnp.where(jnp.isnan(p_log), 1.0, p_log)
    a_log = jnp.where(jnp.isnan(a_log), 1.0, a_log)
    return jnp.sum((p_log - a_log) ** 2)


if __name__ == "__main__":
    key = jax.random.PRNGKey(0)
    k1, k2 = jax.random.split(key)

    # Case 1: 2048 elements (multiple of 128) -> pure Pallas path, no copies.
    shape = (2, 4, 16, 16)
    pred = jax.random.uniform(k1, shape, dtype=jnp.float32, minval=0.0, maxval=5.0)
    actual = jax.random.uniform(k2, shape, dtype=jnp.float32, minval=0.0, maxval=5.0)
    # Inject a value making log(pred + 1) NaN to exercise the eps=1 path.
    pred = pred.at[0, 0, 0, 0].set(-2.0)

    loss = rmsle_loss(pred, actual)
    jax.block_until_ready(loss)
    ref = _ref_loss(pred, actual)
    assert jnp.allclose(loss, ref, rtol=1e-5, atol=1e-5), (loss, ref)

    # Case 2: 1500 elements (not a multiple of 128) -> masked partial block
    # in the kernel plus the scalar tail path in the wrapper.
    k3, k4 = jax.random.split(k2)
    shape2 = (5, 300)
    pred2 = jax.random.uniform(k3, shape2, dtype=jnp.float32, minval=0.0, maxval=3.0)
    actual2 = jax.random.uniform(k4, shape2, dtype=jnp.float32, minval=0.0, maxval=3.0)
    loss2 = rmsle_loss(pred2, actual2)
    jax.block_until_ready(loss2)
    ref2 = _ref_loss(pred2, actual2)
    assert jnp.allclose(loss2, ref2, rtol=1e-5, atol=1e-5), (loss2, ref2)

    print("KERNEL_OK")
</pallas_src>

<mosaic_0001>
module attributes {stable_mosaic.version = 11 : i64} {
  func.func @_rmsle_kernel(%arg0: i32, %arg1: i32, %arg2: memref<16x128xf32, #tpu.memory_space<vmem>>, %arg3: memref<16x128xf32, #tpu.memory_space<vmem>>, %arg4: memref<1x1xf32, #tpu.memory_space<smem>>, %arg5: memref<8x128xf32, #tpu.memory_space<vmem>>) attributes {dimension_semantics = [#tpu.dimension_semantics<parallel>, #tpu.dimension_semantics<arbitrary>], iteration_bounds = array<i64: 1, 1>, scalar_prefetch = 0 : i64, scratch_operands = 1 : i64, tpu.core_type = #tpu.core_type<tc>, window_params = [{transform_indices = @transform_0, window_bounds = array<i64: 16, 128>}, {transform_indices = @transform_1, window_bounds = array<i64: 16, 128>}, {transform_indices = @transform_2, window_bounds = array<i64: 1, 1>}]} {
    %c0_i32 = arith.constant 0 : i32
    %0 = arith.cmpi eq, %arg1, %c0_i32 : i32
    %1 = arith.extui %0 : i1 to i32
    %c0_i32_0 = arith.constant 0 : i32
    %2 = arith.cmpi ne, %1, %c0_i32_0 : i32
    scf.if %2 {
      %cst_14 = arith.constant 0.000000e+00 : f32
      %27 = vector.broadcast %cst_14 : f32 to vector<8x128xf32>
      %c0_15 = arith.constant 0 : index
      %c0_16 = arith.constant 0 : index
      %28 = vector.load %arg5[%c0_15, %c0_16] : memref<8x128xf32, #tpu.memory_space<vmem>>, vector<8x128xf32>
      tpu.vector_store %arg5[%c0_15, %c0_16], %27 {strides = array<i32>} : memref<8x128xf32, #tpu.memory_space<vmem>>, vector<8x128xf32>,
    } else {
    }
    %c0 = arith.constant 0 : index
    %c0_1 = arith.constant 0 : index
    %3 = vector.load %arg2[%c0, %c0_1] : memref<16x128xf32, #tpu.memory_space<vmem>>, vector<16x128xf32>
    %c0_2 = arith.constant 0 : index
    %c0_3 = arith.constant 0 : index
    %4 = vector.load %arg3[%c0_2, %c0_3] : memref<16x128xf32, #tpu.memory_space<vmem>>, vector<16x128xf32>
    %cst = arith.constant 1.000000e+00 : f32
    %5 = vector.broadcast %cst : f32 to vector<16x128xf32>
    %6 = arith.addf %3, %5 : vector<16x128xf32>
    %7 = math.log %6 : vector<16x128xf32>
    %cst_4 = arith.constant 1.000000e+00 : f32
    %8 = vector.broadcast %cst_4 : f32 to vector<16x128xf32>
    %9 = arith.addf %4, %8 : vector<16x128xf32>
    %10 = math.log %9 : vector<16x128xf32>
    %11 = arith.cmpf one, %7, %7 : vector<16x128xf32>
    %cst_5 = arith.constant 1.000000e+00 : f32
    %12 = vector.broadcast %cst_5 : f32 to vector<16x128xf32>
    %13 = arith.select %11, %12, %7 : vector<16x128xi1>, vector<16x128xf32>
    %14 = arith.cmpf one, %10, %10 : vector<16x128xf32>
    %cst_6 = arith.constant 1.000000e+00 : f32
    %15 = vector.broadcast %cst_6 : f32 to vector<16x128xf32>
    %16 = arith.select %14, %15, %10 : vector<16x128xi1>, vector<16x128xf32>
    %17 = arith.subf %13, %16 : vector<16x128xf32>
    %18 = arith.mulf %17, %17 : vector<16x128xf32>
    %c0_7 = arith.constant 0 : index
    %c0_8 = arith.constant 0 : index
    %19 = vector.load %arg5[%c0_7, %c0_8] : memref<8x128xf32, #tpu.memory_space<vmem>>, vector<8x128xf32>
    %20 = vector.shape_cast %18 : vector<16x128xf32> to vector<2x8x128xf32>
    %cst_9 = arith.constant dense<0.000000e+00> : vector<8x128xf32>
    %21 = vector.multi_reduction <add>, %20, %cst_9 [0] : vector<2x8x128xf32> to vector<8x128xf32>
    %22 = arith.addf %19, %21 : vector<8x128xf32>
    %c0_10 = arith.constant 0 : index
    %c0_11 = arith.constant 0 : index
    %23 = vector.load %arg5[%c0_10, %c0_11] : memref<8x128xf32, #tpu.memory_space<vmem>>, vector<8x128xf32>
    tpu.vector_store %arg5[%c0_10, %c0_11], %22 {strides = array<i32>} : memref<8x128xf32, #tpu.memory_space<vmem>>, vector<8x128xf32>,
    %c0_i32_12 = arith.constant 0 : i32
    %24 = arith.cmpi eq, %arg1, %c0_i32_12 : i32
    %25 = arith.extui %24 : i1 to i32
    %c0_i32_13 = arith.constant 0 : i32
    %26 = arith.cmpi ne, %25, %c0_i32_13 : i32
    scf.if %26 {
      %c0_14 = arith.constant 0 : index
      %c0_15 = arith.constant 0 : index
      %27 = vector.load %arg5[%c0_14, %c0_15] : memref<8x128xf32, #tpu.memory_space<vmem>>, vector<8x128xf32>
      %28 = vector.shape_cast %27 : vector<8x128xf32> to vector<1x8x128xf32>
      %cst_16 = arith.constant dense<0.000000e+00> : vector<1xf32>
      %29 = vector.multi_reduction <add>, %28, %cst_16 [1, 2] : vector<1x8x128xf32> to vector<1xf32>
      %30 = vector.shape_cast %29 : vector<1xf32> to vector<1x1x1xf32>
      %31 = vector.extract %30[0, 0, 0] : f32 from vector<1x1x1xf32>
      %c0_17 = arith.constant 0 : index
      %c0_18 = arith.constant 0 : index
      %32 = memref.load %arg4[%c0_17, %c0_18] : memref<1x1xf32, #tpu.memory_space<smem>>
      memref.store %31, %arg4[%c0_17, %c0_18] : memref<1x1xf32, #tpu.memory_space<smem>>
    } else {
    }
    return
  }
  func.func @transform_0(%arg0: i32, %arg1: i32) -> (i32, i32) {
    %c1_i32 = arith.constant 1 : i32
    %0 = arith.muli %arg0, %c1_i32 : i32
    %1 = arith.addi %0, %arg1 : i32
    %c0_i32 = arith.constant 0 : i32
    %2 = arith.minsi %1, %c0_i32 : i32
    %c0_i32_0 = arith.constant 0 : i32
    %c0_i32_1 = arith.constant 0 : i32
    return %2, %c0_i32_0 : i32, i32
  }
  func.func @transform_1(%arg0: i32, %arg1: i32) -> (i32, i32) {
    %c1_i32 = arith.constant 1 : i32
    %0 = arith.muli %arg0, %c1_i32 : i32
    %1 = arith.addi %0, %arg1 : i32
    %c0_i32 = arith.constant 0 : i32
    %2 = arith.minsi %1, %c0_i32 : i32
    %c0_i32_0 = arith.constant 0 : i32
    %c0_i32_1 = arith.constant 0 : i32
    return %2, %c0_i32_0 : i32, i32
  }
  func.func @transform_2(%arg0: i32, %arg1: i32) -> (i32, i32) {
    %c0_i32 = arith.constant 0 : i32
    %c0_i32_0 = arith.constant 0 : i32
    return %arg0, %c0_i32 : i32, i32
  }
}

</mosaic_0001>

<bundles_post_ra>
// kernel: tpu_custom_call.1
= control target key start
LH: loop header
LB: loop body
LE: loop exit
PB: predicated region body
PF: predicated region fallthrough
CT: control target
= control target key end

     0   :  { %7 = vsyncpa [#allocation4], 0  ;;  %s262_s0 = inlined_call_operand.hbm [shape: f32[16,128], index: 0, kind: input, shape index: {}]   ;;  %s263_s1 = inlined_call_operand.hbm [shape: f32[16,128], index: 1, kind: input, shape index: {}]   ;;  %s264_s2 = inlined_call_operand.hbm [shape: f32[1,1], index: 2, kind: output, shape index: {}]  }
   0x1   :  { %8 = vsyncpa [#allocation7], 0 }
   0x2   :  { %9 = vsyncpa [#allocation5], 0  ;;  %s206_s9 = smov [#allocation3]   ;;  %s146_s13 = scalar_lea.hbm %s262_s0, 256 }
   0x3   :  { %s21_s10 = sshll.u32 %s206_s9, 4  ;;  %p147_p0 = scmp.ne.s32.totalorder %s262_s0, %s146_s13  ;;  %s22_s10 = int_to_ptr.vmem [resolvable:$true] %s21_s10 }
   0x4   :  { %p150_p1 = scmp.lt.u32.totalorder %s146_s13, %s262_s0 }
   0x6   :  { %p152_p2 = pnand %p150_p1, %p147_p0 }
   0x8   :  { %155 = shalt.err (!%p152_p2)
}
   0x9   :  { %s156_s18 = scalar_lea.vmem %s22_s10, 256  ;;  %p161_p4 = scmp.lt.s32.totalorder %s22_s10, %s22_s10 }
   0xa   :  { %p157_p3 = scmp.ne.s32.totalorder %s22_s10, %s156_s18  ;;  %p162_p5 = scmp.lt.s32.totalorder %s156_s18, %s156_s18 }
   0xc   :  { %p163_p6 = por %p162_p5, %p161_p4 }
   0xe   :  { %p164_p7 = pnand %p163_p6, %p157_p3 }
  0x10   :  { %167 = shalt.err (!%p164_p7)
}
  0x11   :  { %s207_s19 = smov 128   ;;  %s208_s20 = smov 8  }
  0x12   :  { %27 = dma.hbm_to_vmem [thread:$0]  %s262_s0, 256, %s22_s10, [#allocation4], %s207_s19, %s207_s19, %s208_s20  }
  0x13   :  { %s209_s23 = smov [#allocation6]   ;;  %s168_s27 = scalar_lea.hbm %s263_s1, 256 }
  0x14   :  { %s39_s24 = sshll.u32 %s209_s23, 4  ;;  %p169_p8 = scmp.ne.s32.totalorder %s263_s1, %s168_s27  ;;  %s40_s24 = int_to_ptr.vmem [resolvable:$true] %s39_s24 }
  0x15   :  { %p172_p9 = scmp.lt.u32.totalorder %s168_s27, %s263_s1 }
  0x17   :  { %p174_p10 = pnand %p172_p9, %p169_p8 }
  0x19   :  { %177 = shalt.err (!%p174_p10)
}
  0x1a   :  { %s178_s4 = scalar_lea.vmem %s40_s24, 256  ;;  %p183_p12 = scmp.lt.s32.totalorder %s40_s24, %s40_s24 }
  0x1b   :  { %p179_p11 = scmp.ne.s32.totalorder %s40_s24, %s178_s4  ;;  %p184_p13 = scmp.lt.s32.totalorder %s178_s4, %s178_s4 }
  0x1d   :  { %p185_p0 = por %p184_p13, %p183_p12 }
  0x1f   :  { %p186_p1 = pnand %p185_p0, %p179_p11 }
  0x21   :  { %189 = shalt.err (!%p186_p1)
}
  0x22   :  { %45 = dma.hbm_to_vmem [thread:$0]  %s263_s1, 256, %s40_s24, [#allocation7], %s207_s19, %s207_s19, %s208_s20  }
  0x23   :  { %200 = dma.done.wait [#allocation4], 256  }
  0x24   :  { %201 = vsyncadd [#allocation4], 4294967040 }
  0x25   :  { %202 = dma.done.wait [#allocation7], 256  }
  0x26   :  { %203 = vsyncadd [#allocation7], 4294967040  ;;  %v65_v0 = vld [vmem:[#allocation3] sm:$0xff]  ;;  %v66_v1 = vld [vmem:[#allocation3 + $0x8] sm:$0xff]  ;;  %s190_s8 = scalar_lea.hbm %s264_s2, 16 }
  0x27   :  { %v67_v2 = vld [vmem:[#allocation6] sm:$0xff]  ;;  %v68_v3 = vld [vmem:[#allocation6 + $0x8] sm:$0xff]  ;;  %v69_v4 = vadd.f32 1.0, %v65_v0  ;;  %v70_v5 = vadd.f32 1.0, %v66_v1  ;;  %p191_p2 = scmp.ne.s32.totalorder %s264_s2, %s190_s8  ;;  %p194_p3 = scmp.lt.u32.totalorder %s190_s8, %s264_s2 }
  0x28   :  { %v75_v6 = vadd.f32 1.0, %v67_v2  ;;  %v76_v7 = vadd.f32 1.0, %v68_v3 }
  0x29   :  { %138 = vlog2.f32 %v69_v4  ;;  %p196_p4 = pnand %p194_p3, %p191_p2 }
  0x2a   :  { %140 = vlog2.f32 %v70_v5 }
  0x2b   :  { %142 = vlog2.f32 %v75_v6 }
  0x2c   :  { %144 = vlog2.f32 %v76_v7 }
  0x33   :  { %v139_v8 = vpop.eup %138 }
  0x34   :  { %v141_v9 = vpop.eup %140  ;;  %v72_v10 = vmul.f32 0.6931472, %v139_v8 }
  0x35   :  { %v143_v11 = vpop.eup %142  ;;  %v74_v12 = vmul.f32 0.6931472, %v141_v9 }
  0x36   :  { %v145_v13 = vpop.eup %144  ;;  %v78_v14 = vmul.f32 0.6931472, %v143_v11  ;;  %vm81_vm0 = vcmp.ne.f32.partialorder %v72_v10, %v72_v10 }
  0x37   :  { %v80_v15 = vmul.f32 0.6931472, %v145_v13  ;;  %vm82_vm1 = vcmp.ne.f32.partialorder %v74_v12, %v74_v12  ;;  %v83_v16 = vsel %vm81_vm0, 1.0, %v72_v10 }
  0x38   :  { %v84_v17 = vsel %vm82_vm1, 1.0, %v74_v12  ;;  %vm85_vm2 = vcmp.ne.f32.partialorder %v78_v14, %v78_v14 }
  0x39   :  { %vm86_vm3 = vcmp.ne.f32.partialorder %v80_v15, %v80_v15  ;;  %v87_v18 = vsel %vm85_vm2, 1.0, %v78_v14 }
  0x3a   :  { %v88_v19 = vsel %vm86_vm3, 1.0, %v80_v15  ;;  %v89_v20 = vsub.f32 %v83_v16, %v87_v18 }
  0x3b   :  { %v90_v21 = vsub.f32 %v84_v17, %v88_v19 }
  0x3c   :  { %v91_v22 = vmul.f32 %v89_v20, %v89_v20 }
  0x3d   :  { %v92_v23 = vmul.f32 %v90_v21, %v90_v21 }
  0x3f   :  { %v94_v24 = vadd.f32 %v92_v23, %v91_v22 }
  0x41   :  { %101 = vadd.xlane.f32.xlu0 %v94_v24 }
  0xce   :  { %v102_v25 = vpop.xlane.xlu0 %101 }
  0xcf   :  { %v103_v26 = vrot.slane %v102_v25, 4 }
  0xd1   :  { %v104_v27 = vadd.f32 %v103_v26, %v102_v25 }
  0xd3   :  { %v105_v28 = vrot.slane %v104_v27, 2 }
  0xd5   :  { %v106_v29 = vadd.f32 %v105_v28, %v104_v27 }
  0xd7   :  { %v107_v30 = vrot.slane %v106_v29, 1 }
  0xd9   :  { %v108_v31 = vadd.f32 %v107_v30, %v106_v29 }
  0xdb   :  { %131 = vpush %v108_v31 }
 0x10c   :  { %s132_s1 = spop %131 }
 0x10d   :  { %111 = sst [smem:[#allocation8]] %s132_s1 }
 0x10e   :  { %199 = shalt.err (!%p196_p4)
}
 0x10f   :  { %s210_s13 = smov [#allocation8]  }
 0x110   :  { %119 = dma.smem_to_hbm %s210_s13, 16, %s264_s2, [#allocation5]  }
 0x111   :  { %204 = dma.done.wait [#allocation5], 16  }
 0x112   :  { %205 = vsyncadd [#allocation5], 4294967280 }
 0x113   :  { %123 = sfence }
 0x114   :  { %124 = vsyncpa [#allocation4], 1 }
 0x115   :  { %125 = vsyncpa [#allocation7], 1 }
 0x116   :  { %126 = vsyncpa [#allocation5], 1 }

</bundles_post_ra>
